<compile_context>
chip_gen: v7x
topology: tpu7x:2x2x1
jax: 0.10.0
libtpu: 0.0.40
codegen_flags: <defaults>
</compile_context>

<pallas_src>
import functools

import jax
import jax.numpy as jnp
from jax.experimental import pallas as pl
from jax.experimental.pallas import tpu as pltpu


def encdec_kernel(x_ref, w1_ref, b1_ref, w2_ref, b2_ref, o_ref,
                  pad_ref, stage_ref, *, H, W, Wp, Mpad, NB, Cin):
    """Fused conv3x3+bias+ReLU encoder and conv1x1+bias decoder for NB images.

    x_ref     : (NB, Cin, H, W)        f32  unpadded input block
    w1_ref    : (Cmid, 9*Cin)          f32  encoder weight, K-index = (kh*3+kw)*Cin + c
    b1_ref    : (Cmid, 1)              f32
    w2_ref    : (Cout, Cmid)           f32  decoder (1x1 conv) weight, transposed
    b2_ref    : (Cout, 1)              f32
    o_ref     : (Cout, NB*Mpad)        f32  lane-dense output (junk cols dropped outside)
    pad_ref   : (NB, Cin, Lpad)        f32  scratch: zero-padded, flattened images
    stage_ref : (9*Cin, NB*Mpad)       f32  scratch: fused-GEMM RHS (9 shifted taps)
    """
    # 1) Build the zero-padded, spatially flattened images in VMEM.
    #    (replaces the wrapper-side jnp.pad/reshape pass; halo stays zero)
    pad_ref[...] = jnp.zeros_like(pad_ref)
    xb = x_ref[...]                                   # (NB, Cin, H, W)
    for h in range(H):
        start = (h + 1) * Wp + 1                      # 1 top pad row, 1 left pad col
        pad_ref[:, :, start:start + W] = xb[:, :, h, :]

    # 2) Stage the 9 shifted taps of every image into one (9*Cin, NB*Mpad) RHS.
    #    Tap (kh, kw) for all output pixels is the contiguous flat slice at
    #    static offset kh*Wp + kw of the padded flat image.
    for nb in range(NB):
        for kh in range(3):
            for kw in range(3):
                k = kh * 3 + kw
                off = kh * Wp + kw                    # static python int
                stage_ref[k * Cin:(k + 1) * Cin,
                          nb * Mpad:(nb + 1) * Mpad] = pad_ref[nb, :, off:off + Mpad]

    # 3) Encoder: single fused GEMM (Cmid, 9*Cin) x (9*Cin, NB*Mpad), f32 acc,
    #    bias + ReLU on the VPU.
    acc = jnp.dot(w1_ref[...], stage_ref[...], preferred_element_type=jnp.float32)
    feat = jnp.maximum(acc + b1_ref[...], 0.0)

    # 4) Decoder: 1x1 conv as a tiny GEMM; result is (Cout, NB*Mpad) -> lane-dense store.
    out = jnp.dot(w2_ref[...], feat, preferred_element_type=jnp.float32) + b2_ref[...]
    o_ref[...] = out.astype(o_ref.dtype)


def model_forward(x_nchw, w1_hwio, b1, w2_io, b2):
    """Forward of ModelBase: outputs = decoder(encoder(x)), returned as a dict."""
    N, Cin, H, W = x_nchw.shape
    Cmid = w1_hwio.shape[-1]
    Cout = w2_io.shape[-1]

    Wp = W + 2                                   # padded width
    Mcols = H * Wp                               # real output cols per image (+2 junk/row)
    Mpad = 128 * pl.cdiv(Mcols, 128)             # lane-dense / whole-vreg GEMM N dim
    Lpad = 2 * Wp + 2 + Mpad                     # keeps every shifted slice in bounds

    # <= 2 grid steps: all images per step is ideal on single-TC v5e/v6e; 2 steps
    # with "parallel" semantics keeps both v7x TensorCores busy.
    num_steps = min(N, 2)
    NB = pl.cdiv(N, num_steps)                   # images folded into GEMM M per step
    G = pl.cdiv(N, NB)                           # grid size
    Npad = G * NB
    if Npad != N:
        x_nchw = jnp.pad(x_nchw, ((0, Npad - N), (0, 0), (0, 0), (0, 0)))
    x_nchw = x_nchw.astype(jnp.float32)

    # Encoder weight as (Cmid, 9*Cin): K-index = (kh*3+kw)*Cin + c, matching the
    # staging scratch layout, so the 9 taps fuse into one GEMM.
    w1k = jnp.transpose(w1_hwio.reshape(9, Cin, Cmid), (2, 0, 1)).reshape(Cmid, 9 * Cin)
    w1k = w1k.astype(jnp.float32)
    w2t = jnp.transpose(w2_io, (1, 0)).astype(jnp.float32)      # (Cout, Cmid)
    b1c = b1.reshape(Cmid, 1).astype(jnp.float32)
    b2c = b2.reshape(Cout, 1).astype(jnp.float32)

    kernel = functools.partial(encdec_kernel, H=H, W=W, Wp=Wp, Mpad=Mpad,
                               NB=NB, Cin=Cin)

    flops = 2 * Npad * Mpad * (9 * Cin * Cmid + Cmid * Cout)
    bytes_accessed = (Npad * Cin * H * W * 4 + Cmid * 9 * Cin * 4 + Cout * Cmid * 4
                      + Cmid * 4 + Cout * 4 + Npad * Cout * Mpad * 4)

    out_flat = pl.pallas_call(
        kernel,
        out_shape=jax.ShapeDtypeStruct((G, Cout, NB * Mpad), jnp.float32),
        grid=(G,),
        in_specs=[
            pl.BlockSpec((NB, Cin, H, W), lambda g: (g, 0, 0, 0)),   # raw NCHW images
            pl.BlockSpec((Cmid, 9 * Cin), lambda g: (0, 0)),         # fused encoder weight
            pl.BlockSpec((Cmid, 1), lambda g: (0, 0)),               # encoder bias
            pl.BlockSpec((Cout, Cmid), lambda g: (0, 0)),            # decoder weight
            pl.BlockSpec((Cout, 1), lambda g: (0, 0)),               # decoder bias
        ],
        out_specs=pl.BlockSpec((None, Cout, NB * Mpad), lambda g: (g, 0, 0)),
        scratch_shapes=[
            pltpu.VMEM((NB, Cin, Lpad), jnp.float32),                # padded flat images
            pltpu.VMEM((9 * Cin, NB * Mpad), jnp.float32),           # fused-GEMM RHS
        ],
        compiler_params=pltpu.CompilerParams(
            dimension_semantics=("parallel",),
        ),
        cost_estimate=pl.CostEstimate(
            flops=flops, transcendentals=0, bytes_accessed=bytes_accessed),
    )(x_nchw, w1k, b1c, w2t, b2c)

    # (G, Cout, NB*Mpad) -> (N, Cout, H, W): peel off per-image columns, drop the
    # Mpad tail and the 2 junk columns per row. Output is already channels-first.
    out = out_flat.reshape(G, Cout, NB, Mpad)
    out = jnp.transpose(out, (0, 2, 1, 3)).reshape(Npad, Cout, Mpad)
    out = out[:N, :, :Mcols].reshape(N, Cout, H, Wp)[..., :W]
    return {"out": out}


def reference_forward(x_nchw, w1_hwio, b1, w2_io, b2):
    """Plain-JAX f32 reference (lax.conv) for correctness checking."""
    feat = jax.lax.conv_general_dilated(
        x_nchw, w1_hwio, window_strides=(1, 1), padding="SAME",
        dimension_numbers=("NCHW", "HWIO", "NCHW"))
    feat = jnp.maximum(feat + b1.reshape(1, -1, 1, 1), 0.0)
    out = jnp.einsum("nchw,cd->ndhw", feat, w2_io) + b2.reshape(1, -1, 1, 1)
    return out


if __name__ == "__main__":
    key = jax.random.PRNGKey(0)
    k_x, k_w1, k_b1, k_w2, k_b2 = jax.random.split(key, 5)

    N, Cin, H, W = 2, 4, 16, 16
    Cmid, Cout = 8, 4

    x = jax.random.normal(k_x, (N, Cin, H, W), dtype=jnp.float32)
    w1 = jax.random.normal(k_w1, (3, 3, Cin, Cmid), dtype=jnp.float32) * 0.1
    b1 = jax.random.normal(k_b1, (Cmid,), dtype=jnp.float32) * 0.1
    w2 = jax.random.normal(k_w2, (Cmid, Cout), dtype=jnp.float32) * 0.1
    b2 = jax.random.normal(k_b2, (Cout,), dtype=jnp.float32) * 0.1

    outputs = jax.jit(model_forward)(x, w1, b1, w2, b2)
    out = jax.block_until_ready(outputs["out"])

    ref = reference_forward(x, w1, b1, w2, b2)
    assert out.shape == (N, Cout, H, W)
    # f32 end-to-end with f32 accumulation; tolerance left loose only to cover
    # MXU default-precision (bf16-pass) matmul rounding.
    assert jnp.allclose(out, ref, atol=2e-2, rtol=2e-2), "mismatch vs reference"

    print("KERNEL_OK")
</pallas_src>

<mosaic_0001>
module attributes {stable_mosaic.version = 11 : i64} {
  func.func @encdec_kernel(%arg0: i32, %arg1: memref<1x4x16x16xf32, #tpu.memory_space<vmem>>, %arg2: memref<8x36xf32, #tpu.memory_space<vmem>>, %arg3: memref<8x1xf32, #tpu.memory_space<vmem>>, %arg4: memref<4x8xf32, #tpu.memory_space<vmem>>, %arg5: memref<4x1xf32, #tpu.memory_space<vmem>>, %arg6: memref<1x4x384xf32, #tpu.memory_space<vmem>>, %arg7: memref<1x4x422xf32, #tpu.memory_space<vmem>>, %arg8: memref<36x384xf32, #tpu.memory_space<vmem>>) attributes {dimension_semantics = [#tpu.dimension_semantics<parallel>], iteration_bounds = array<i64: 2>, scalar_prefetch = 0 : i64, scratch_operands = 2 : i64, tpu.core_type = #tpu.core_type<tc>, window_params = [{transform_indices = @transform_0, window_bounds = array<i64: 1, 4, 16, 16>}, {pipeline_mode = #tpu.pipeline_mode<synchronous>, transform_indices = @transform_1, window_bounds = array<i64: 8, 36>}, {pipeline_mode = #tpu.pipeline_mode<synchronous>, transform_indices = @transform_2, window_bounds = array<i64: 8, 1>}, {pipeline_mode = #tpu.pipeline_mode<synchronous>, transform_indices = @transform_3, window_bounds = array<i64: 4, 8>}, {pipeline_mode = #tpu.pipeline_mode<synchronous>, transform_indices = @transform_4, window_bounds = array<i64: 4, 1>}, {transform_indices = @transform_5, window_bounds = array<i64: 1, 4, 384>}]} {
    %cst = arith.constant 0.000000e+00 : f32
    %0 = vector.broadcast %cst : f32 to vector<1x4x422xf32>
    %c0 = arith.constant 0 : index
    %c0_0 = arith.constant 0 : index
    %c0_1 = arith.constant 0 : index
    %1 = vector.load %arg7[%c0, %c0_0, %c0_1] : memref<1x4x422xf32, #tpu.memory_space<vmem>>, vector<1x4x422xf32>
    tpu.vector_store %arg7[%c0, %c0_0, %c0_1], %0 {strides = array<i32>} : memref<1x4x422xf32, #tpu.memory_space<vmem>>, vector<1x4x422xf32>,
    %c0_2 = arith.constant 0 : index
    %c0_3 = arith.constant 0 : index
    %c0_4 = arith.constant 0 : index
    %c0_5 = arith.constant 0 : index
    %2 = vector.load %arg1[%c0_2, %c0_3, %c0_4, %c0_5] : memref<1x4x16x16xf32, #tpu.memory_space<vmem>>, vector<1x4x16x16xf32>
    %3 = vector.extract_strided_slice %2 {offsets = [0, 0, 0, 0], sizes = [1, 4, 1, 16], strides = [1, 1, 1, 1]} : vector<1x4x16x16xf32> to vector<1x4x1x16xf32>
    %4 = vector.shape_cast %3 : vector<1x4x1x16xf32> to vector<1x4x16xf32>
    %c0_6 = arith.constant 0 : index
    %c0_7 = arith.constant 0 : index
    %c19 = arith.constant 19 : index
    %5 = vector.load %arg7[%c0_6, %c0_7, %c19] : memref<1x4x422xf32, #tpu.memory_space<vmem>>, vector<1x4x16xf32>
    tpu.vector_store %arg7[%c0_6, %c0_7, %c19], %4 {strides = array<i32>} : memref<1x4x422xf32, #tpu.memory_space<vmem>>, vector<1x4x16xf32>,
    %6 = vector.extract_strided_slice %2 {offsets = [0, 0, 1, 0], sizes = [1, 4, 1, 16], strides = [1, 1, 1, 1]} : vector<1x4x16x16xf32> to vector<1x4x1x16xf32>
    %7 = vector.shape_cast %6 : vector<1x4x1x16xf32> to vector<1x4x16xf32>
    %c0_8 = arith.constant 0 : index
    %c0_9 = arith.constant 0 : index
    %c37 = arith.constant 37 : index
    %8 = vector.load %arg7[%c0_8, %c0_9, %c37] : memref<1x4x422xf32, #tpu.memory_space<vmem>>, vector<1x4x16xf32>
    tpu.vector_store %arg7[%c0_8, %c0_9, %c37], %7 {strides = array<i32>} : memref<1x4x422xf32, #tpu.memory_space<vmem>>, vector<1x4x16xf32>,
    %9 = vector.extract_strided_slice %2 {offsets = [0, 0, 2, 0], sizes = [1, 4, 1, 16], strides = [1, 1, 1, 1]} : vector<1x4x16x16xf32> to vector<1x4x1x16xf32>
    %10 = vector.shape_cast %9 : vector<1x4x1x16xf32> to vector<1x4x16xf32>
    %c0_10 = arith.constant 0 : index
    %c0_11 = arith.constant 0 : index
    %c55 = arith.constant 55 : index
    %11 = vector.load %arg7[%c0_10, %c0_11, %c55] : memref<1x4x422xf32, #tpu.memory_space<vmem>>, vector<1x4x16xf32>
    tpu.vector_store %arg7[%c0_10, %c0_11, %c55], %10 {strides = array<i32>} : memref<1x4x422xf32, #tpu.memory_space<vmem>>, vector<1x4x16xf32>,
    %12 = vector.extract_strided_slice %2 {offsets = [0, 0, 3, 0], sizes = [1, 4, 1, 16], strides = [1, 1, 1, 1]} : vector<1x4x16x16xf32> to vector<1x4x1x16xf32>
    %13 = vector.shape_cast %12 : vector<1x4x1x16xf32> to vector<1x4x16xf32>
    %c0_12 = arith.constant 0 : index
    %c0_13 = arith.constant 0 : index
    %c73 = arith.constant 73 : index
    %14 = vector.load %arg7[%c0_12, %c0_13, %c73] : memref<1x4x422xf32, #tpu.memory_space<vmem>>, vector<1x4x16xf32>
    tpu.vector_store %arg7[%c0_12, %c0_13, %c73], %13 {strides = array<i32>} : memref<1x4x422xf32, #tpu.memory_space<vmem>>, vector<1x4x16xf32>,
    %15 = vector.extract_strided_slice %2 {offsets = [0, 0, 4, 0], sizes = [1, 4, 1, 16], strides = [1, 1, 1, 1]} : vector<1x4x16x16xf32> to vector<1x4x1x16xf32>
    %16 = vector.shape_cast %15 : vector<1x4x1x16xf32> to vector<1x4x16xf32>
    %c0_14 = arith.constant 0 : index
    %c0_15 = arith.constant 0 : index
    %c91 = arith.constant 91 : index
    %17 = vector.load %arg7[%c0_14, %c0_15, %c91] : memref<1x4x422xf32, #tpu.memory_space<vmem>>, vector<1x4x16xf32>
    tpu.vector_store %arg7[%c0_14, %c0_15, %c91], %16 {strides = array<i32>} : memref<1x4x422xf32, #tpu.memory_space<vmem>>, vector<1x4x16xf32>,
    %18 = vector.extract_strided_slice %2 {offsets = [0, 0, 5, 0], sizes = [1, 4, 1, 16], strides = [1, 1, 1, 1]} : vector<1x4x16x16xf32> to vector<1x4x1x16xf32>
    %19 = vector.shape_cast %18 : vector<1x4x1x16xf32> to vector<1x4x16xf32>
    %c0_16 = arith.constant 0 : index
    %c0_17 = arith.constant 0 : index
    %c109 = arith.constant 109 : index
    %20 = vector.load %arg7[%c0_16, %c0_17, %c109] : memref<1x4x422xf32, #tpu.memory_space<vmem>>, vector<1x4x16xf32>
    tpu.vector_store %arg7[%c0_16, %c0_17, %c109], %19 {strides = array<i32>} : memref<1x4x422xf32, #tpu.memory_space<vmem>>, vector<1x4x16xf32>,
    %21 = vector.extract_strided_slice %2 {offsets = [0, 0, 6, 0], sizes = [1, 4, 1, 16], strides = [1, 1, 1, 1]} : vector<1x4x16x16xf32> to vector<1x4x1x16xf32>
    %22 = vector.shape_cast %21 : vector<1x4x1x16xf32> to vector<1x4x16xf32>
    %c0_18 = arith.constant 0 : index
    %c0_19 = arith.constant 0 : index
    %c127 = arith.constant 127 : index
    %23 = vector.load %arg7[%c0_18, %c0_19, %c127] : memref<1x4x422xf32, #tpu.memory_space<vmem>>, vector<1x4x16xf32>
    tpu.vector_store %arg7[%c0_18, %c0_19, %c127], %22 {strides = array<i32>} : memref<1x4x422xf32, #tpu.memory_space<vmem>>, vector<1x4x16xf32>,
    %24 = vector.extract_strided_slice %2 {offsets = [0, 0, 7, 0], sizes = [1, 4, 1, 16], strides = [1, 1, 1, 1]} : vector<1x4x16x16xf32> to vector<1x4x1x16xf32>
    %25 = vector.shape_cast %24 : vector<1x4x1x16xf32> to vector<1x4x16xf32>
    %c0_20 = arith.constant 0 : index
    %c0_21 = arith.constant 0 : index
    %c145 = arith.constant 145 : index
    %26 = vector.load %arg7[%c0_20, %c0_21, %c145] : memref<1x4x422xf32, #tpu.memory_space<vmem>>, vector<1x4x16xf32>
    tpu.vector_store %arg7[%c0_20, %c0_21, %c145], %25 {strides = array<i32>} : memref<1x4x422xf32, #tpu.memory_space<vmem>>, vector<1x4x16xf32>,
    %27 = vector.extract_strided_slice %2 {offsets = [0, 0, 8, 0], sizes = [1, 4, 1, 16], strides = [1, 1, 1, 1]} : vector<1x4x16x16xf32> to vector<1x4x1x16xf32>
    %28 = vector.shape_cast %27 : vector<1x4x1x16xf32> to vector<1x4x16xf32>
    %c0_22 = arith.constant 0 : index
    %c0_23 = arith.constant 0 : index
    %c163 = arith.constant 163 : index
    %29 = vector.load %arg7[%c0_22, %c0_23, %c163] : memref<1x4x422xf32, #tpu.memory_space<vmem>>, vector<1x4x16xf32>
    tpu.vector_store %arg7[%c0_22, %c0_23, %c163], %28 {strides = array<i32>} : memref<1x4x422xf32, #tpu.memory_space<vmem>>, vector<1x4x16xf32>,
    %30 = vector.extract_strided_slice %2 {offsets = [0, 0, 9, 0], sizes = [1, 4, 1, 16], strides = [1, 1, 1, 1]} : vector<1x4x16x16xf32> to vector<1x4x1x16xf32>
    %31 = vector.shape_cast %30 : vector<1x4x1x16xf32> to vector<1x4x16xf32>
    %c0_24 = arith.constant 0 : index
    %c0_25 = arith.constant 0 : index
    %c181 = arith.constant 181 : index
    %32 = vector.load %arg7[%c0_24, %c0_25, %c181] : memref<1x4x422xf32, #tpu.memory_space<vmem>>, vector<1x4x16xf32>
    tpu.vector_store %arg7[%c0_24, %c0_25, %c181], %31 {strides = array<i32>} : memref<1x4x422xf32, #tpu.memory_space<vmem>>, vector<1x4x16xf32>,
    %33 = vector.extract_strided_slice %2 {offsets = [0, 0, 10, 0], sizes = [1, 4, 1, 16], strides = [1, 1, 1, 1]} : vector<1x4x16x16xf32> to vector<1x4x1x16xf32>
    %34 = vector.shape_cast %33 : vector<1x4x1x16xf32> to vector<1x4x16xf32>
    %c0_26 = arith.constant 0 : index
    %c0_27 = arith.constant 0 : index
    %c199 = arith.constant 199 : index
    %35 = vector.load %arg7[%c0_26, %c0_27, %c199] : memref<1x4x422xf32, #tpu.memory_space<vmem>>, vector<1x4x16xf32>
    tpu.vector_store %arg7[%c0_26, %c0_27, %c199], %34 {strides = array<i32>} : memref<1x4x422xf32, #tpu.memory_space<vmem>>, vector<1x4x16xf32>,
    %36 = vector.extract_strided_slice %2 {offsets = [0, 0, 11, 0], sizes = [1, 4, 1, 16], strides = [1, 1, 1, 1]} : vector<1x4x16x16xf32> to vector<1x4x1x16xf32>
    %37 = vector.shape_cast %36 : vector<1x4x1x16xf32> to vector<1x4x16xf32>
    %c0_28 = arith.constant 0 : index
    %c0_29 = arith.constant 0 : index
    %c217 = arith.constant 217 : index
    %38 = vector.load %arg7[%c0_28, %c0_29, %c217] : memref<1x4x422xf32, #tpu.memory_space<vmem>>, vector<1x4x16xf32>
    tpu.vector_store %arg7[%c0_28, %c0_29, %c217], %37 {strides = array<i32>} : memref<1x4x422xf32, #tpu.memory_space<vmem>>, vector<1x4x16xf32>,
    %39 = vector.extract_strided_slice %2 {offsets = [0, 0, 12, 0], sizes = [1, 4, 1, 16], strides = [1, 1, 1, 1]} : vector<1x4x16x16xf32> to vector<1x4x1x16xf32>
    %40 = vector.shape_cast %39 : vector<1x4x1x16xf32> to vector<1x4x16xf32>
    %c0_30 = arith.constant 0 : index
    %c0_31 = arith.constant 0 : index
    %c235 = arith.constant 235 : index
    %41 = vector.load %arg7[%c0_30, %c0_31, %c235] : memref<1x4x422xf32, #tpu.memory_space<vmem>>, vector<1x4x16xf32>
    tpu.vector_store %arg7[%c0_30, %c0_31, %c235], %40 {strides = array<i32>} : memref<1x4x422xf32, #tpu.memory_space<vmem>>, vector<1x4x16xf32>,
    %42 = vector.extract_strided_slice %2 {offsets = [0, 0, 13, 0], sizes = [1, 4, 1, 16], strides = [1, 1, 1, 1]} : vector<1x4x16x16xf32> to vector<1x4x1x16xf32>
    %43 = vector.shape_cast %42 : vector<1x4x1x16xf32> to vector<1x4x16xf32>
    %c0_32 = arith.constant 0 : index
    %c0_33 = arith.constant 0 : index
    %c253 = arith.constant 253 : index
    %44 = vector.load %arg7[%c0_32, %c0_33, %c253] : memref<1x4x422xf32, #tpu.memory_space<vmem>>, vector<1x4x16xf32>
    tpu.vector_store %arg7[%c0_32, %c0_33, %c253], %43 {strides = array<i32>} : memref<1x4x422xf32, #tpu.memory_space<vmem>>, vector<1x4x16xf32>,
    %45 = vector.extract_strided_slice %2 {offsets = [0, 0, 14, 0], sizes = [1, 4, 1, 16], strides = [1, 1, 1, 1]} : vector<1x4x16x16xf32> to vector<1x4x1x16xf32>
    %46 = vector.shape_cast %45 : vector<1x4x1x16xf32> to vector<1x4x16xf32>
    %c0_34 = arith.constant 0 : index
    %c0_35 = arith.constant 0 : index
    %c271 = arith.constant 271 : index
    %47 = vector.load %arg7[%c0_34, %c0_35, %c271] : memref<1x4x422xf32, #tpu.memory_space<vmem>>, vector<1x4x16xf32>
    tpu.vector_store %arg7[%c0_34, %c0_35, %c271], %46 {strides = array<i32>} : memref<1x4x422xf32, #tpu.memory_space<vmem>>, vector<1x4x16xf32>,
    %48 = vector.extract_strided_slice %2 {offsets = [0, 0, 15, 0], sizes = [1, 4, 1, 16], strides = [1, 1, 1, 1]} : vector<1x4x16x16xf32> to vector<1x4x1x16xf32>
    %49 = vector.shape_cast %48 : vector<1x4x1x16xf32> to vector<1x4x16xf32>
    %c0_36 = arith.constant 0 : index
    %c0_37 = arith.constant 0 : index
    %c289 = arith.constant 289 : index
    %50 = vector.load %arg7[%c0_36, %c0_37, %c289] : memref<1x4x422xf32, #tpu.memory_space<vmem>>, vector<1x4x16xf32>
    tpu.vector_store %arg7[%c0_36, %c0_37, %c289], %49 {strides = array<i32>} : memref<1x4x422xf32, #tpu.memory_space<vmem>>, vector<1x4x16xf32>,
    %c0_38 = arith.constant 0 : index
    %c0_39 = arith.constant 0 : index
    %c0_40 = arith.constant 0 : index
    %51 = vector.load %arg7[%c0_38, %c0_39, %c0_40] : memref<1x4x422xf32, #tpu.memory_space<vmem>>, vector<1x4x384xf32>
    %52 = vector.shape_cast %51 : vector<1x4x384xf32> to vector<4x384xf32>
    %c0_41 = arith.constant 0 : index
    %c0_42 = arith.constant 0 : index
    %53 = vector.load %arg8[%c0_41, %c0_42] : memref<36x384xf32, #tpu.memory_space<vmem>>, vector<4x384xf32>
    tpu.vector_store %arg8[%c0_41, %c0_42], %52 {strides = array<i32>} : memref<36x384xf32, #tpu.memory_space<vmem>>, vector<4x384xf32>,
    %c0_43 = arith.constant 0 : index
    %c0_44 = arith.constant 0 : index
    %c1 = arith.constant 1 : index
    %54 = vector.load %arg7[%c0_43, %c0_44, %c1] : memref<1x4x422xf32, #tpu.memory_space<vmem>>, vector<1x4x384xf32>
    %55 = vector.shape_cast %54 : vector<1x4x384xf32> to vector<4x384xf32>
    %c4 = arith.constant 4 : index
    %c0_45 = arith.constant 0 : index
    %56 = vector.load %arg8[%c4, %c0_45] : memref<36x384xf32, #tpu.memory_space<vmem>>, vector<4x384xf32>
    tpu.vector_store %arg8[%c4, %c0_45], %55 {strides = array<i32>} : memref<36x384xf32, #tpu.memory_space<vmem>>, vector<4x384xf32>,
    %c0_46 = arith.constant 0 : index
    %c0_47 = arith.constant 0 : index
    %c2 = arith.constant 2 : index
    %57 = vector.load %arg7[%c0_46, %c0_47, %c2] : memref<1x4x422xf32, #tpu.memory_space<vmem>>, vector<1x4x384xf32>
    %58 = vector.shape_cast %57 : vector<1x4x384xf32> to vector<4x384xf32>
    %c8 = arith.constant 8 : index
    %c0_48 = arith.constant 0 : index
    %59 = vector.load %arg8[%c8, %c0_48] : memref<36x384xf32, #tpu.memory_space<vmem>>, vector<4x384xf32>
    tpu.vector_store %arg8[%c8, %c0_48], %58 {strides = array<i32>} : memref<36x384xf32, #tpu.memory_space<vmem>>, vector<4x384xf32>,
    %c0_49 = arith.constant 0 : index
    %c0_50 = arith.constant 0 : index
    %c18 = arith.constant 18 : index
    %60 = vector.load %arg7[%c0_49, %c0_50, %c18] : memref<1x4x422xf32, #tpu.memory_space<vmem>>, vector<1x4x384xf32>
    %61 = vector.shape_cast %60 : vector<1x4x384xf32> to vector<4x384xf32>
    %c12 = arith.constant 12 : index
    %c0_51 = arith.constant 0 : index
    %62 = vector.load %arg8[%c12, %c0_51] : memref<36x384xf32, #tpu.memory_space<vmem>>, vector<4x384xf32>
    tpu.vector_store %arg8[%c12, %c0_51], %61 {strides = array<i32>} : memref<36x384xf32, #tpu.memory_space<vmem>>, vector<4x384xf32>,
    %c0_52 = arith.constant 0 : index
    %c0_53 = arith.constant 0 : index
    %c19_54 = arith.constant 19 : index
    %63 = vector.load %arg7[%c0_52, %c0_53, %c19_54] : memref<1x4x422xf32, #tpu.memory_space<vmem>>, vector<1x4x384xf32>
    %64 = vector.shape_cast %63 : vector<1x4x384xf32> to vector<4x384xf32>
    %c16 = arith.constant 16 : index
    %c0_55 = arith.constant 0 : index
    %65 = vector.load %arg8[%c16, %c0_55] : memref<36x384xf32, #tpu.memory_space<vmem>>, vector<4x384xf32>
    tpu.vector_store %arg8[%c16, %c0_55], %64 {strides = array<i32>} : memref<36x384xf32, #tpu.memory_space<vmem>>, vector<4x384xf32>,
    %c0_56 = arith.constant 0 : index
    %c0_57 = arith.constant 0 : index
    %c20 = arith.constant 20 : index
    %66 = vector.load %arg7[%c0_56, %c0_57, %c20] : memref<1x4x422xf32, #tpu.memory_space<vmem>>, vector<1x4x384xf32>
    %67 = vector.shape_cast %66 : vector<1x4x384xf32> to vector<4x384xf32>
    %c20_58 = arith.constant 20 : index
    %c0_59 = arith.constant 0 : index
    %68 = vector.load %arg8[%c20_58, %c0_59] : memref<36x384xf32, #tpu.memory_space<vmem>>, vector<4x384xf32>
    tpu.vector_store %arg8[%c20_58, %c0_59], %67 {strides = array<i32>} : memref<36x384xf32, #tpu.memory_space<vmem>>, vector<4x384xf32>,
    %c0_60 = arith.constant 0 : index
    %c0_61 = arith.constant 0 : index
    %c36 = arith.constant 36 : index
    %69 = vector.load %arg7[%c0_60, %c0_61, %c36] : memref<1x4x422xf32, #tpu.memory_space<vmem>>, vector<1x4x384xf32>
    %70 = vector.shape_cast %69 : vector<1x4x384xf32> to vector<4x384xf32>
    %c24 = arith.constant 24 : index
    %c0_62 = arith.constant 0 : index
    %71 = vector.load %arg8[%c24, %c0_62] : memref<36x384xf32, #tpu.memory_space<vmem>>, vector<4x384xf32>
    tpu.vector_store %arg8[%c24, %c0_62], %70 {strides = array<i32>} : memref<36x384xf32, #tpu.memory_space<vmem>>, vector<4x384xf32>,
    %c0_63 = arith.constant 0 : index
    %c0_64 = arith.constant 0 : index
    %c37_65 = arith.constant 37 : index
    %72 = vector.load %arg7[%c0_63, %c0_64, %c37_65] : memref<1x4x422xf32, #tpu.memory_space<vmem>>, vector<1x4x384xf32>
    %73 = vector.shape_cast %72 : vector<1x4x384xf32> to vector<4x384xf32>
    %c28 = arith.constant 28 : index
    %c0_66 = arith.constant 0 : index
    %74 = vector.load %arg8[%c28, %c0_66] : memref<36x384xf32, #tpu.memory_space<vmem>>, vector<4x384xf32>
    tpu.vector_store %arg8[%c28, %c0_66], %73 {strides = array<i32>} : memref<36x384xf32, #tpu.memory_space<vmem>>, vector<4x384xf32>,
    %c0_67 = arith.constant 0 : index
    %c0_68 = arith.constant 0 : index
    %c38 = arith.constant 38 : index
    %75 = vector.load %arg7[%c0_67, %c0_68, %c38] : memref<1x4x422xf32, #tpu.memory_space<vmem>>, vector<1x4x384xf32>
    %76 = vector.shape_cast %75 : vector<1x4x384xf32> to vector<4x384xf32>
    %c32 = arith.constant 32 : index
    %c0_69 = arith.constant 0 : index
    %77 = vector.load %arg8[%c32, %c0_69] : memref<36x384xf32, #tpu.memory_space<vmem>>, vector<4x384xf32>
    tpu.vector_store %arg8[%c32, %c0_69], %76 {strides = array<i32>} : memref<36x384xf32, #tpu.memory_space<vmem>>, vector<4x384xf32>,
    %c0_70 = arith.constant 0 : index
    %c0_71 = arith.constant 0 : index
    %78 = vector.load %arg2[%c0_70, %c0_71] : memref<8x36xf32, #tpu.memory_space<vmem>>, vector<8x36xf32>
    %c0_72 = arith.constant 0 : index
    %c0_73 = arith.constant 0 : index
    %79 = vector.load %arg8[%c0_72, %c0_73] : memref<36x384xf32, #tpu.memory_space<vmem>>, vector<36x384xf32>
    %cst_74 = arith.constant dense<0.000000e+00> : vector<8x384xf32>
    %80 = tpu.matmul %78, %79, %cst_74 {dimension_numbers = #tpu.dot_dimension_numbers<[1], [0], [0], [1], [0, 0, 1, 1], [], []>} : vector<8x36xf32>, vector<36x384xf32>, vector<8x384xf32> -> vector<8x384xf32>
    %c0_75 = arith.constant 0 : index
    %c0_76 = arith.constant 0 : index
    %81 = vector.load %arg3[%c0_75, %c0_76] : memref<8x1xf32, #tpu.memory_space<vmem>>, vector<8x1xf32>
    %82 = vector.broadcast %81 : vector<8x1xf32> to vector<8x384xf32>
    %83 = arith.addf %80, %82 : vector<8x384xf32>
    %cst_77 = arith.constant 0.000000e+00 : f32
    %84 = vector.broadcast %cst_77 : f32 to vector<8x384xf32>
    %85 = arith.maximumf %83, %84 : vector<8x384xf32>
    %c0_78 = arith.constant 0 : index
    %c0_79 = arith.constant 0 : index
    %86 = vector.load %arg4[%c0_78, %c0_79] : memref<4x8xf32, #tpu.memory_space<vmem>>, vector<4x8xf32>
    %cst_80 = arith.constant dense<0.000000e+00> : vector<4x384xf32>
    %87 = tpu.matmul %86, %85, %cst_80 {dimension_numbers = #tpu.dot_dimension_numbers<[1], [0], [0], [1], [0, 0, 1, 1], [], []>} : vector<4x8xf32>, vector<8x384xf32>, vector<4x384xf32> -> vector<4x384xf32>
    %c0_81 = arith.constant 0 : index
    %c0_82 = arith.constant 0 : index
    %88 = vector.load %arg5[%c0_81, %c0_82] : memref<4x1xf32, #tpu.memory_space<vmem>>, vector<4x1xf32>
    %89 = vector.broadcast %88 : vector<4x1xf32> to vector<4x384xf32>
    %90 = arith.addf %87, %89 : vector<4x384xf32>
    %c0_83 = arith.constant 0 : index
    %c0_84 = arith.constant 0 : index
    %c0_85 = arith.constant 0 : index
    %91 = vector.load %arg6[%c0_83, %c0_84, %c0_85] : memref<1x4x384xf32, #tpu.memory_space<vmem>>, vector<1x4x384xf32>
    %92 = vector.shape_cast %91 : vector<1x4x384xf32> to vector<4x384xf32>
    %93 = vector.shape_cast %90 : vector<4x384xf32> to vector<1x4x384xf32>
    tpu.vector_store %arg6[%c0_83, %c0_84, %c0_85], %93 {strides = array<i32>} : memref<1x4x384xf32, #tpu.memory_space<vmem>>, vector<1x4x384xf32>,
    return
  }
  func.func @transform_0(%arg0: i32) -> (i32, i32, i32, i32) {
    %c0_i32 = arith.constant 0 : i32
    %c0_i32_0 = arith.constant 0 : i32
    %c0_i32_1 = arith.constant 0 : i32
    %c0_i32_2 = arith.constant 0 : i32
    return %arg0, %c0_i32, %c0_i32_0, %c0_i32_1 : i32, i32, i32, i32
  }
  func.func @transform_1(%arg0: i32) -> (i32, i32) {
    %c0_i32 = arith.constant 0 : i32
    %c0_i32_0 = arith.constant 0 : i32
    %c0_i32_1 = arith.constant 0 : i32
    return %c0_i32, %c0_i32_0 : i32, i32
  }
  func.func @transform_2(%arg0: i32) -> (i32, i32) {
    %c0_i32 = arith.constant 0 : i32
    %c0_i32_0 = arith.constant 0 : i32
    %c0_i32_1 = arith.constant 0 : i32
    return %c0_i32, %c0_i32_0 : i32, i32
  }
  func.func @transform_3(%arg0: i32) -> (i32, i32) {
    %c0_i32 = arith.constant 0 : i32
    %c0_i32_0 = arith.constant 0 : i32
    %c0_i32_1 = arith.constant 0 : i32
    return %c0_i32, %c0_i32_0 : i32, i32
  }
  func.func @transform_4(%arg0: i32) -> (i32, i32) {
    %c0_i32 = arith.constant 0 : i32
    %c0_i32_0 = arith.constant 0 : i32
    %c0_i32_1 = arith.constant 0 : i32
    return %c0_i32, %c0_i32_0 : i32, i32
  }
  func.func @transform_5(%arg0: i32) -> (i32, i32, i32) {
    %c0_i32 = arith.constant 0 : i32
    %c0_i32_0 = arith.constant 0 : i32
    %c0_i32_1 = arith.constant 0 : i32
    return %arg0, %c0_i32, %c0_i32_0 : i32, i32, i32
  }
}

</mosaic_0001>

<bundles_post_ra>
// kernel: model_forward.1
= control target key start
LH: loop header
LB: loop body
LE: loop exit
PB: predicated region body
PF: predicated region fallthrough
CT: control target
= control target key end

     0   :  { %s1254_s18 = smov 0   ;;  %s1539_s0 = inlined_call_operand.vmem [shape: f32[2,4,16,16], index: 0, kind: input, shape index: {}]   ;;  %s1540_s1 = inlined_call_operand.vmem [shape: f32[8,36], index: 1, kind: input, shape index: {}]   ;;  %s1541_s2 = inlined_call_operand.vmem [shape: f32[8,1], index: 2, kind: input, shape index: {}]   ;;  %s1542_s3 = inlined_call_operand.vmem [shape: f32[4,8], index: 3, kind: input, shape index: {}]   ;;  %s1543_s4 = inlined_call_operand.vmem [shape: f32[4,1], index: 4, kind: input, shape index: {}]   ;;  %s1544_s5 = inlined_call_operand.vmem [shape: f32[2,4,384], index: 5, kind: output, shape index: {}]  }
   0x1 LB: > { %s1085_s19 = sadd.s32 4294967295, %s1197_s18   ;;  %p1089_p0 = scmp.ge.s32.totalorder %s1197_s18, 1  ;;  %s1197_s18 = sphi %s1254_s18, %s15_s18  }
   0x2   : > { %p187_p1 = scmp.lt.s32.totalorder %s1197_s18, 3 }
   0x4   : > { %p188_p2 = pnand %p1089_p0, %p187_p1 }
   0x5   : > { %p215_p3 = scmp.lt.s32.totalorder (!%p188_p2), %s1085_s19, 1  ;;  %v1199_v0 = vmov (!%p188_p2), 0.0   ;;  %vm243_vm0 = vcmask (!%p188_p2), 1041409   ;;  %vm245_vm1 = vcmask (!%p188_p2), 1045509   ;;  %vm248_vm2 = vcmask (!%p188_p2), 1042434   ;;  %s1200_s24 = smov (!%p188_p2), 55  }
   0x6   : > { %191 = sbr.rel (%p188_p2) target bundleno = 801 (0x321), region = 40  ;;  %225 = vst [vmem:[#allocation2] sm:$0xff] (!%p188_p2), %v1199_v0  ;;  %792 = vmatprep.mubr.f32.mxu0 (!%p188_p2), %v1199_v0  ;;  %vm250_vm3 = vcmask (!%p188_p2), 1046534   ;;  %vm253_vm4 = vcmask (!%p188_p2), 1043459   ;;  %vm255_vm5 = vcmask (!%p188_p2), 1047559   ;;  %s1201_s25 = smov (!%p188_p2), 19  }
   0x7   : > { %s1202_s26 = smov (!%p188_p2), 73   ;;  %s1203_s27 = smov (!%p188_p2), 37   ;;  %vm226_vm6 = vcmask (!%p188_p2), 1043456   ;;  %vm227_vm7 = vcmask (!%p188_p2), 310276   ;;  %vm260_vm9 = vcmask (!%p188_p2), 281752   ;;  %vm274_vm10 = vcmask (!%p188_p2), 429352  }
   0x8   : > { %s1204_s28 = smov (!%p188_p2), 53   ;;  %s1205_s29 = smov (!%p188_p2), 35   ;;  %vm228_vm8 = vmor (!%p188_p2), %vm227_vm7, %vm226_vm6  ;;  %vm288_vm11 = vcmask (!%p188_p2), 576952   ;;  %vm302_vm12 = vcmask (!%p188_p2), 724552   ;;  %vm320_vm13 = vcmask (!%p188_p2), 872152   ;;  %vm351_vm14 = vcmask (!%p188_p2), 1044472  }
   0x9   : > { %s1206_s30 = smov (!%p188_p2), 91   ;;  %s1207_s6 = smov (!%p188_p2), 127   ;;  %229 = vst.msk [vmem:[#allocation2 + $0x8] sm:$0xff] (!%p188_p2), %vm228_vm8, %v1199_v0  ;;  %vm352_vm15 = vcmask (!%p188_p2), 121860   ;;  %vm413_vm7 = vcmask (!%p188_p2), 708152   ;;  %vm462_vm8 = vcmask (!%p188_p2), 1044456  }
   0xa   : > { %s1208_s7 = smov (!%p188_p2), 17   ;;  %s1209_s8 = smov (!%p188_p2), 109  }
   0xb   : > { %s1210_s9 = smov (!%p188_p2), 125   ;;  %s1211_s10 = smov (!%p188_p2), 71  }
   0xc   : > { %s1212_s11 = smov (!%p188_p2), 107   ;;  %s1213_s12 = smov (!%p188_p2), 89  }
   0xd   : > { %s1546_s19 = smov (!%p215_p3, %s1085_s19), 1  ;;  %s1214_s13 = smov 15  }
   0xe   : > { %s1102_s20 = sshll.u32 %s1546_s19, 6  ;;  %s1215_s14 = smov 33  }
   0xf   : > { %s1270_s23 = scalar_lea.vmem %s1539_s0, %s1102_s20  ;;  %s1216_s15 = smov 126  }
  0x10   : > { %v230_v1 = vld [vmem:[%s1270_s23] sm:$0xff]  ;;  %v232_v2 = vld [vmem:[%s1270_s23 + $0x10] sm:$0xff]  ;;  %v1295_v29 = vld [vmem:[%s1270_s23 + $0x8] sm:$0xff]  ;;  %s1217_s16 = smov 108   ;;  %s1218_s17 = smov 110  }
  0x11   : > { %v234_v3 = vld [vmem:[%s1270_s23 + $0x20] sm:$0xff]  ;;  %v1276_v4 = vld [vmem:[%s1270_s23 + $0x30] sm:$0xff]  ;;  %v276_v5 = vrot.slane %v230_v1, 2  ;;  %v277_v6 = vrot.slane %v232_v2, 1  ;;  %v242_v8 = vrot.slane %v232_v2, 7  ;;  %v290_v12 = vrot.slane %v230_v1, 3 }
  0x12   : > { %v1278_v7 = vcombine.high %v234_v3, %v234_v3  ;;  %v282_v9 = vrot.slane %v1276_v4, 7  ;;  %v247_v10 = vrot.slane %v234_v3, 6  ;;  %v252_v11 = vrot.slane %v1276_v4, 5  ;;  %v1298_v30 = vld [vmem:[%s1270_s23 + $0x28] sm:$0xff]  ;;  %v1305_v35 = vld [vmem:[%s1270_s23 + $0x18] sm:$0xff]  ;;  %s1219_s20 = smov 92  }
  0x13   : > { %v278_v13 = vsel %vm243_vm0, %v277_v6, %v276_v5  ;;  %v244_v14 = vsel %vm243_vm0, %v242_v8, %v230_v1  ;;  %v291_v15 = vrot.slane %v232_v2, 2  ;;  %v294_v16 = vrot.slane %v234_v3, 1  ;;  %v1308_v36 = vld [vmem:[%s1270_s23 + $0x38] sm:$0xff]  ;;  %s1220_s21 = smov 90  }
  0x14   : > { %v279_v17 = vsel %vm245_vm1, %v277_v6, %v278_v13  ;;  %v246_v18 = vsel %vm245_vm1, %v242_v8, %v244_v14  ;;  %v262_v19 = vrot.slane %v230_v1, 1  ;;  %v265_v20 = vrot.slane %v234_v3, 7 }
  0x15   : > { %v280_v21 = vsel %vm248_vm2, %v234_v3, %v279_v17  ;;  %v249_v22 = vsel %vm248_vm2, %v247_v10, %v246_v18  ;;  %v292_v23 = vsel %vm243_vm0, %v291_v15, %v290_v12  ;;  %v268_v24 = vrot.slane %v1276_v4, 6 }
  0x16   : > { %v281_v25 = vsel %vm250_vm3, %v234_v3, %v280_v21  ;;  %v251_v26 = vsel %vm250_vm3, %v247_v10, %v249_v22  ;;  %v293_v27 = vsel %vm245_vm1, %v291_v15, %v292_v23  ;;  %v263_v28 = vsel %vm243_vm0, %v232_v2, %v262_v19 }
  0x17   : > { %v283_v31 = vsel %vm253_vm4, %v282_v9, %v281_v25  ;;  %v254_v32 = vsel %vm253_vm4, %v252_v11, %v251_v26  ;;  %v295_v33 = vsel %vm248_vm2, %v294_v16, %v293_v27  ;;  %v264_v34 = vsel %vm245_vm1, %v232_v2, %v263_v28 }
  0x18   : > { %v284_v37 = vsel %vm255_vm5, %v282_v9, %v283_v31  ;;  %v256_v38 = vsel %vm255_vm5, %v252_v11, %v254_v32  ;;  %v296_v39 = vsel %vm250_vm3, %v294_v16, %v295_v33  ;;  %v266_v40 = vsel %vm248_vm2, %v265_v20, %v264_v34 }
  0x19   : > { %285 = vrot.lane.b32.xlu1 %v284_v37, %s1200_s24  ;;  %257 = vrot.lane.b32.xlu0 %v256_v38, %s1201_s25  ;;  %v297_v41 = vsel %vm253_vm4, %v1276_v4, %v296_v39  ;;  %v267_v42 = vsel %vm250_vm3, %v265_v20, %v266_v40  ;;  %v387_v43 = vrot.slane %v1295_v29, 1  ;;  %v390_v44 = vrot.slane %v1298_v30, 7 }
  0x1a   : > { %v298_v45 = vsel %vm255_vm5, %v1276_v4, %v297_v41  ;;  %v269_v46 = vsel %vm253_vm4, %v268_v24, %v267_v42  ;;  %v393_v47 = vrot.slane %v1308_v36, 6  ;;  %v373_v48 = vrot.slane %v1305_v35, 7 }
  0x1b   : > { %v270_v49 = vsel %vm255_vm5, %v268_v24, %v269_v46  ;;  %v388_v50 = vsel %vm243_vm0, %v1305_v35, %v387_v43  ;;  %v376_v51 = vrot.slane %v1298_v30, 6  ;;  %v379_v52 = vrot.slane %v1308_v36, 5 }
  0x1c   : > { %v389_v53 = vsel %vm245_vm1, %v1305_v35, %v388_v50  ;;  %v374_v54 = vsel %vm243_vm0, %v373_v48, %v1295_v29  ;;  %v304_v55 = vcombine.high %v230_v1, %v230_v1  ;;  %v305_v56 = vcombine.high %v232_v2, %v232_v2 }
  0x1d   : > { %299 = vrot.lane.b32.xlu1 %v298_v45, %s1202_s26  ;;  %271 = vrot.lane.b32.xlu0 %v270_v49, %s1203_s27  ;;  %v391_v57 = vsel %vm248_vm2, %v390_v44, %v389_v53  ;;  %v375_v58 = vsel %vm245_vm1, %v373_v48, %v374_v54  ;;  %v307_v59 = vcombine.high %v1276_v4, %v1276_v4  ;;  %v311_v60 = vrot.slane %v1278_v7, 6 }
  0x1e   : > { %v392_v61 = vsel %vm250_vm3, %v390_v44, %v391_v57  ;;  %v377_v62 = vsel %vm248_vm2, %v376_v51, %v375_v58  ;;  %v308_v63 = vrot.slane %v305_v56, 7  ;;  %v336_v1 = vrot.slane %v304_v55, 2 }
  0x1f   : > { %v394_v2 = vsel %vm253_vm4, %v393_v47, %v392_v61  ;;  %v378_v3 = vsel %vm250_vm3, %v376_v51, %v377_v62  ;;  %v314_v5 = vrot.slane %v307_v59, 5  ;;  %v337_v6 = vrot.slane %v305_v56, 1 }
  0x20   : > { %v395_v8 = vsel %vm255_vm5, %v393_v47, %v394_v2  ;;  %v380_v9 = vsel %vm253_vm4, %v379_v52, %v378_v3  ;;  %v309_v4 = vsel %vm243_vm0, %v308_v63, %v304_v55  ;;  %v342_v10 = vrot.slane %v307_v59, 7 }
  0x21   : > { %396 = vrot.lane.b32.xlu1 %v395_v8, %s1204_s28  ;;  %v381_v11 = vsel %vm255_vm5, %v379_v52, %v380_v9  ;;  %v310_v12 = vsel %vm245_vm1, %v308_v63, %v309_v4  ;;  %v338_v13 = vsel %vm243_vm0, %v337_v6, %v336_v1  ;;  %v355_v14 = vrot.slane %v304_v55, 3 }
  0x22   : > { %382 = vrot.lane.b32.xlu0 %v381_v11, %s1205_s29  ;;  %v312_v15 = vsel %vm248_vm2, %v311_v60, %v310_v12  ;;  %v339_v16 = vsel %vm245_vm1, %v337_v6, %v338_v13  ;;  %v356_v17 = vrot.slane %v305_v56, 2  ;;  %v359_v18 = vrot.slane %v1278_v7, 1 }
  0x23   : > { %v313_v19 = vsel %vm250_vm3, %v311_v60, %v312_v15  ;;  %v340_v20 = vsel %vm248_vm2, %v1278_v7, %v339_v16  ;;  %v322_v21 = vrot.slane %v304_v55, 1  ;;  %v325_v22 = vrot.slane %v1278_v7, 7 }
  0x24   : > { %v315_v23 = vsel %vm253_vm4, %v314_v5, %v313_v19  ;;  %v341_v24 = vsel %vm250_vm3, %v1278_v7, %v340_v20  ;;  %v357_v25 = vsel %vm243_vm0, %v356_v17, %v355_v14  ;;  %v328_v26 = vrot.slane %v307_v59, 6 }
  0x25   : > { %v316_v27 = vsel %vm255_vm5, %v314_v5, %v315_v23  ;;  %v343_v28 = vsel %vm253_vm4, %v342_v10, %v341_v24  ;;  %v358_v31 = vsel %vm245_vm1, %v356_v17, %v357_v25  ;;  %v323_v32 = vsel %vm243_vm0, %v305_v56, %v322_v21 }
  0x26   : > { %317 = vrot.lane.b32.xlu1 %v316_v27, %s1206_s30  ;;  %v344_v33 = vsel %vm255_vm5, %v342_v10, %v343_v28  ;;  %v360_v34 = vsel %vm248_vm2, %v359_v18, %v358_v31  ;;  %v324_v7 = vsel %vm245_vm1, %v305_v56, %v323_v32  ;;  %v1369_v37 = vcombine.high %v1295_v29, %v1295_v29 }
  0x27   : > { %345 = vrot.lane.b32.xlu0 %v344_v33, %s1207_s6  ;;  %v361_v38 = vsel %vm250_vm3, %v359_v18, %v360_v34  ;;  %v326_v39 = vsel %vm248_vm2, %v325_v22, %v324_v7  ;;  %v1376_v40 = vcombine.high %v1305_v35, %v1305_v35  ;;  %v1380_v41 = vcombine.high %v1298_v30, %v1298_v30 }
  0x28   : > { %v362_v42 = vsel %vm253_vm4, %v307_v59, %v361_v38  ;;  %v327_v43 = vsel %vm250_vm3, %v325_v22, %v326_v39  ;;  %v1386_v44 = vcombine.high %v1308_v36, %v1308_v36  ;;  %v447_v45 = vrot.slane %v1369_v37, 1 }
  0x29   : > { %v363_v46 = vsel %vm255_vm5, %v307_v59, %v362_v42  ;;  %v329_v47 = vsel %vm253_vm4, %v328_v26, %v327_v43  ;;  %v450_v48 = vrot.slane %v1380_v41, 7  ;;  %v401_v49 = vrot.slane %v1295_v29, 2 }
  0x2a   : > { %364 = vrot.lane.b32.xlu1 %v363_v46, %s1208_s7  ;;  %v330_v50 = vsel %vm255_vm5, %v328_v26, %v329_v47  ;;  %v448_v51 = vsel %vm243_vm0, %v1376_v40, %v447_v45  ;;  %v453_v52 = vrot.slane %v1386_v44, 6  ;;  %v402_v53 = vrot.slane %v1305_v35, 1 }
  0x2b   : > { %331 = vrot.lane.b32.xlu0 %v330_v50, %s1209_s8  ;;  %v449_v54 = vsel %vm245_vm1, %v1376_v40, %v448_v51  ;;  %v407_v55 = vrot.slane %v1308_v36, 7  ;;  %v415_v56 = vrot.slane %v1295_v29, 3  ;;  %v416_v57 = vrot.slane %v1305_v35, 2 }
  0x2c   : > { %v451_v58 = vsel %vm248_vm2, %v450_v48, %v449_v54  ;;  %v403_v59 = vsel %vm243_vm0, %v402_v53, %v401_v49  ;;  %v419_v60 = vrot.slane %v1298_v30, 1  ;;  %v433_v61 = vrot.slane %v1376_v40, 7 }
  0x2d   : > { %v452_v62 = vsel %vm250_vm3, %v450_v48, %v451_v58  ;;  %v404_v63 = vsel %vm245_vm1, %v402_v53, %v403_v59  ;;  %v417_v1 = vsel %vm243_vm0, %v416_v57, %v415_v56  ;;  %v436_v2 = vrot.slane %v1380_v41, 6 }
  0x2e   : > { %v454_v29 = vsel %vm253_vm4, %v453_v52, %v452_v62  ;;  %v405_v35 = vsel %vm248_vm2, %v1298_v30, %v404_v63  ;;  %v418_v3 = vsel %vm245_vm1, %v416_v57, %v417_v1  ;;  %v434_v5 = vsel %vm243_vm0, %v433_v61, %v1369_v37 }
  0x2f   : > { %v455_v6 = vsel %vm255_vm5, %v453_v52, %v454_v29  ;;  %v406_v8 = vsel %vm250_vm3, %v1298_v30, %v405_v35  ;;  %v420_v9 = vsel %vm248_vm2, %v419_v60, %v418_v3  ;;  %v435_v4 = vsel %vm245_vm1, %v433_v61, %v434_v5  ;;  %v709_v3 = vld [vmem:[%s1541_s2] sm:$0xff] }
  0x30   : > { %456 = vrot.lane.b32.xlu1 %v455_v6, %s1210_s9  ;;  %v408_v10 = vsel %vm253_vm4, %v407_v55, %v406_v8  ;;  %v421_v11 = vsel %vm250_vm3, %v419_v60, %v420_v9  ;;  %v437_v12 = vsel %vm248_vm2, %v436_v2, %v435_v4  ;;  %v439_v13 = vrot.slane %v1386_v44, 5 }
  0x31   : > { %v409_v14 = vsel %vm255_vm5, %v407_v55, %v408_v10  ;;  %v422_v15 = vsel %vm253_vm4, %v1308_v36, %v421_v11  ;;  %v438_v30 = vsel %vm250_vm3, %v436_v2, %v437_v12  ;;  %v466_v16 = vrot.slane %v1369_v37, 2 }
  0x32   : > { %410 = vrot.lane.b32.xlu0 %v409_v14, %s1211_s10  ;;  %v423_v17 = vsel %vm255_vm5, %v1308_v36, %v422_v15  ;;  %v440_v18 = vsel %vm253_vm4, %v439_v13, %v438_v30  ;;  %v467_v19 = vrot.slane %v1376_v40, 1  ;;  %v480_v21 = vrot.slane %v1369_v37, 3 }
  0x33   : > { %v441_v20 = vsel %vm255_vm5, %v439_v13, %v440_v18  ;;  %v481_v22 = vrot.slane %v1376_v40, 2  ;;  %v484_v23 = vrot.slane %v1380_v41, 1  ;;  %v472_v25 = vrot.slane %v1386_v44, 7 }
  0x34   : > { %442 = vrot.lane.b32.xlu1 %v441_v20, %s1212_s11  ;;  %v468_v24 = vsel %vm243_vm0, %v467_v19, %v466_v16  ;;  %v1221_v2 = vmov 0.0|0.0   ;;  %v1223_v35 = vmov 0  }
  0x35   : > { %v469_v36 = vsel %vm245_vm1, %v467_v19, %v468_v24  ;;  %v482_v26 = vsel %vm243_vm0, %v481_v22, %v480_v21  ;;  %vm348_vm0 = vcmask 1039360   ;;  %1137 = vmatprep.subr.bf16.mxu1 %v1221_v2  ;;  %1177 = vset.pattern.permute.xlu0 %v1223_v35 }
  0x36   : > { %424 = vrot.lane.b32.xlu0 %v423_v17, %s1213_s12  ;;  %v470_v27 = vsel %vm248_vm2, %v1380_v41, %v469_v36  ;;  %v483_v28 = vsel %vm245_vm1, %v481_v22, %v482_v26  ;;  %vm334_vm1 = vcmask 1019752   ;;  %1178 = vset.pattern.permute.xlu1 %v1223_v35 }
  0x37   : > { %v471_v31 = vsel %vm250_vm3, %v1380_v41, %v470_v27  ;;  %v485_v32 = vsel %vm248_vm2, %v484_v23, %v483_v28  ;;  %vm353_vm2 = vmor %vm352_vm15, %vm351_vm14  ;;  %vm478_vm14 = vcmask 248952   ;;  %vm492_vm15 = vcmask 396552  }
  0x38   : > { %v473_v33 = vsel %vm253_vm4, %v472_v25, %v471_v31  ;;  %v486_v34 = vsel %vm250_vm3, %v484_v23, %v485_v32  ;;  %vm367_vm3 = vcmask 265352  }
  0x39   : > { %v474_v7 = vsel %vm255_vm5, %v472_v25, %v473_v33  ;;  %v487_v37 = vsel %vm253_vm4, %v1386_v44, %v486_v34  ;;  %vm385_vm4 = vcmask 412952  }
  0x3a   : > { %475 = vrot.lane.b32.xlu0 %v474_v7, %s1214_s13  ;;  %v488_v38 = vsel %vm255_vm5, %v1386_v44, %v487_v37  ;;  %vm399_vm5 = vcmask 560552  }
  0x3b   : > { %489 = vrot.lane.b32.xlu1 %v488_v38, %s1215_s14 }
  0x8b   : > { %v286_v39 = vpop.permute.xlu1 %285  ;;  %v258_v40 = vpop.permute.xlu0 %257 }
  0x8c   : > { %261 = vst.msk [vmem:[#allocation2] sm:$0xf] %vm260_vm9, %v258_v40  ;;  %vm463_vm9 = vcmask 105476  }
  0x8f   : > { %v300_v41 = vpop.permute.xlu1 %299  ;;  %v272_v42 = vpop.permute.xlu0 %271 }
  0x90   : > { %275 = vst.msk [vmem:[#allocation2] sm:$0xf] %vm274_vm10, %v272_v42  ;;  %vm427_vm10 = vcmask 855752  }
  0x91   : > { %289 = vst.msk [vmem:[#allocation2] sm:$0xf] %vm288_vm11, %v286_v39  ;;  %vm459_vm11 = vcmask 1022976  }
  0x92   : > { %303 = vst.msk [vmem:[#allocation2] sm:$0xf] %vm302_vm12, %v300_v41  ;;  %vm445_vm12 = vcmask 1003352  }
  0x93   : > { %v397_v43 = vpop.permute.xlu1 %396 }
  0x94   : > { %v383_v44 = vpop.permute.xlu0 %382 }
  0x98   : > { %v318_v45 = vpop.permute.xlu1 %317 }
  0x99   : > { %321 = vst.msk [vmem:[#allocation2] sm:$0xf] %vm320_vm13, %v318_v45  ;;  %v346_v46 = vpop.permute.xlu0 %345  ;;  %vm464_vm13 = vmor %vm463_vm9, %vm462_vm8  ;;  %vm659_vm8 = vcmask 744448   ;;  %vm715_vm9 = vcmask 293888  }
  0x9a   : > { %v347_v47 = vrot.slane %v346_v46, 4 }
  0x9c   : > { %v365_v48 = vpop.permute.xlu1 %364  ;;  %v349_v50 = vsel %vm348_vm0, %v347_v47, %v346_v46 }
  0x9d   : > { %v332_v49 = vpop.permute.xlu0 %331 }
  0x9e   : > { %335 = vst.msk [vmem:[#allocation2] sm:$0xf] %vm334_vm1, %v332_v49  ;;  %vm1222_vm1 = vmmov 0  }
  0x9f   : > { %354 = vst.msk [vmem:[#allocation2] sm:$0xff] %vm353_vm2, %v349_v50  ;;  %1121 = vmatprep.mubr.msk.f32.mxu1 %vm1222_vm1, %v1199_v0  ;;  %vm539_vm2 = vcmask 1031168  }
  0xa0   : > { %368 = vst.msk [vmem:[#allocation2 + $0x4] sm:$0xf] %vm367_vm3, %v365_v48  ;;  %vm563_vm3 = vcmask 900096  }
  0xa1   : > { %386 = vst.msk [vmem:[#allocation2 + $0x4] sm:$0xf] %vm385_vm4, %v383_v44  ;;  %vm587_vm4 = vcmask 891904  }
  0xa2   : > { %v457_v51 = vpop.permute.xlu1 %456  ;;  %400 = vst.msk [vmem:[#allocation2 + $0x4] sm:$0xf] %vm399_vm5, %v397_v43  ;;  %vm635_vm5 = vcmask 752640  }
  0xa3   : > { %v458_v53 = vrot.slane %v457_v51, 4 }
  0xa4   : > { %v411_v52 = vpop.permute.xlu0 %410 }
  0xa5   : > { %414 = vst.msk [vmem:[#allocation2 + $0x4] sm:$0xf] %vm413_vm7, %v411_v52  ;;  %v460_v56 = vsel %vm459_vm11, %v458_v53, %v457_v51  ;;  %vm611_vm7 = vcmask 883712  }
  0xa6   : > { %v443_v54 = vpop.permute.xlu1 %442 }
  0xa8   : > { %v425_v55 = vpop.permute.xlu0 %424 }
  0xa9   : > { %428 = vst.msk [vmem:[#allocation2 + $0x4] sm:$0xf] %vm427_vm10, %v425_v55 }
  0xaa   : > { %446 = vst.msk [vmem:[#allocation2 + $0x4] sm:$0xf] %vm445_vm12, %v443_v54 }
  0xab   : > { %465 = vst.msk [vmem:[#allocation2 + $0x4] sm:$0xff] %vm464_vm13, %v460_v56 }
  0xac   : > { %v476_v57 = vpop.permute.xlu0 %475 }
  0xad   : > { %479 = vst.msk [vmem:[#allocation2 + $0x8] sm:$0xf] %vm478_vm14, %v476_v57  ;;  %v490_v58 = vpop.permute.xlu1 %489 }
  0xae   : > { %493 = vst.msk [vmem:[#allocation2 + $0x8] sm:$0xf] %vm492_vm15, %v490_v58 }
  0xb2   : > { %v525_v59 = vld [vmem:[#allocation2] sm:$0xff] }
  0xb3   : > { %531 = vrot.lane.b32.xlu1 %v525_v59, %s1216_s15  ;;  %v529_v60 = vcombine.high %v525_v59, %v525_v59  ;;  %510 = vrot.lane.b32.xlu0 %v525_v59, %s1207_s6  ;;  %499 = vst [vmem:[#allocation3] sm:$0xf] %v525_v59  ;;  %v506_v62 = vcombine.low %v525_v59, %v525_v59 }
  0xb5   : > { %v495_v61 = vld [vmem:[#allocation2 + $0x8] sm:$0xf]  ;;  %500 = vst [vmem:[#allocation3 + $0x8] sm:$0xf] %v529_v60 }
  0xb6   : > { %501 = vst [vmem:[#allocation3 + $0x10] sm:$0xf] %v495_v61  ;;  %v574_v63 = vld [vmem:[#allocation2 + $0x8] sm:$0xff] }
  0xb7   : > { %605 = vrot.lane.b32.xlu1 %v525_v59, %s1217_s16  ;;  %557 = vrot.lane.b32.xlu0 %v525_v59, %s1218_s17  ;;  %v507_v1 = vcombine.low %v574_v63, %v574_v63  ;;  %v578_v29 = vcombine.high %v574_v63, %v574_v63 }
  0xbb   : > { %653 = vrot.lane.b32.xlu1 %v525_v59, %s1206_s30  ;;  %533 = vrot.lane.b32.xlu0 %v529_v60, %s1216_s15 }
  0xbf   : > { %579 = vrot.lane.b32.xlu1 %v525_v59, %s1209_s8  ;;  %508 = vrot.lane.b32.xlu0 %v506_v62, %s1207_s6 }
  0xc3   : > { %627 = vrot.lane.b32.xlu1 %v525_v59, %s1219_s20  ;;  %555 = vrot.lane.b32.xlu0 %v506_v62, %s1218_s17 }
  0xc7   : > { %583 = vrot.lane.b32.xlu0 %v574_v63, %s1209_s8  ;;  %535 = vrot.lane.b32.xlu1 %v574_v63, %s1216_s15 }
  0xcb   : > { %631 = vrot.lane.b32.xlu0 %v574_v63, %s1219_s20  ;;  %581 = vrot.lane.b32.xlu1 %v529_v60, %s1209_s8 }
  0xcf   : > { %603 = vrot.lane.b32.xlu0 %v506_v62, %s1217_s16  ;;  %629 = vrot.lane.b32.xlu1 %v529_v60, %s1219_s20 }
  0xd3   : > { %651 = vrot.lane.b32.xlu0 %v506_v62, %s1206_s30  ;;  %514 = vrot.lane.b32.xlu1 %v574_v63, %s1207_s6 }
  0xd7   : > { %677 = vrot.lane.b32.xlu0 %v529_v60, %s1220_s21  ;;  %561 = vrot.lane.b32.xlu1 %v574_v63, %s1218_s17 }
  0xdb   : > { %607 = vrot.lane.b32.xlu0 %v507_v1, %s1217_s16  ;;  %512 = vrot.lane.b32.xlu1 %v507_v1, %s1207_s6 }
  0xdf   : > { %655 = vrot.lane.b32.xlu0 %v507_v1, %s1206_s30  ;;  %559 = vrot.lane.b32.xlu1 %v507_v1, %s1218_s17 }
  0xe3   : > { %537 = vrot.lane.b32.xlu0 %v578_v29, %s1216_s15  ;;  %609 = vrot.lane.b32.xlu1 %v574_v63, %s1217_s16 }
  0xe7   : > { %585 = vrot.lane.b32.xlu0 %v578_v29, %s1209_s8  ;;  %657 = vrot.lane.b32.xlu1 %v574_v63, %s1206_s30  ;;  %s1143_s30 = smul.u32 12, %s1546_s19 }
  0xe9   : > { %s224_s8 = scalar_lea.vmem %s1544_s5, %s1143_s30 }
  0xeb   : > { %633 = vrot.lane.b32.xlu0 %v578_v29, %s1219_s20  ;;  %679 = vrot.lane.b32.xlu1 %v574_v63, %s1220_s21 }
  0xef   : > { %675 = vrot.lane.b32.xlu0 %v525_v59, %s1220_s21  ;;  %681 = vrot.lane.b32.xlu1 %v578_v29, %s1220_s21 }
  0xf3   : > { %712 = vperm.xlu0 %1177, %v709_v3  }
 0x125   : > { %v532_v5 = vpop.permute.xlu1 %531  ;;  %v511_v6 = vpop.permute.xlu0 %510 }
 0x129   : > { %v606_v8 = vpop.permute.xlu1 %605  ;;  %v558_v9 = vpop.permute.xlu0 %557 }
 0x12d   : > { %v654_v4 = vpop.permute.xlu1 %653  ;;  %v534_v10 = vpop.permute.xlu0 %533 }
 0x12e   : > { %v540_v11 = vsel %vm539_vm2, %v532_v5, %v534_v10 }
 0x12f   : > { %546 = vst [vmem:[#allocation3 + $0x18] sm:$0xf] %v540_v11 }
 0x131   : > { %v580_v12 = vpop.permute.xlu1 %579  ;;  %v509_v13 = vpop.permute.xlu0 %508 }
 0x132   : > { %v516_v14 = vsel %vm348_vm0, %v509_v13, %v511_v6 }
 0x133   : > { %522 = vst [vmem:[#allocation3] sm:$0xf0] %v516_v14 }
 0x135   : > { %v628_v15 = vpop.permute.xlu1 %627  ;;  %v556_v30 = vpop.permute.xlu0 %555 }
 0x136   : > { %v564_v16 = vsel %vm563_vm3, %v556_v30, %v558_v9 }
 0x137   : > { %570 = vst [vmem:[#allocation3 + $0x18] sm:$0xf0] %v564_v16 }
 0x139   : > { %v536_v17 = vpop.permute.xlu1 %535  ;;  %v584_v18 = vpop.permute.xlu0 %583 }
 0x13a   : > { %v541_v19 = vsel %vm539_vm2, %v534_v10, %v536_v17  ;;  %v694_v59 = vld [vmem:[#allocation3] sm:$0xff] }
 0x13b   : > { %547 = vst [vmem:[#allocation3 + $0x20] sm:$0xf] %v541_v19  ;;  %v873_v19 = vld [vmem:[%s1543_s4] sm:$0xf] }
 0x13c   : > { %876 = vperm.xlu1 %1178, %v873_v19  }
 0x13d   : > { %v582_v20 = vpop.permute.xlu1 %581  ;;  %v1490_v21 = vpop.permute.xlu0 %631 }
 0x13e   : > { %v588_v22 = vsel %vm587_vm4, %v580_v12, %v582_v20  ;;  %v589_v23 = vsel %vm587_vm4, %v582_v20, %v584_v18  ;;  %v697_v52 = vld [vmem:[#allocation3 + $0x18] sm:$0xff] }
 0x13f   : > { %594 = vst [vmem:[#allocation3 + $0x30] sm:$0xf] %v588_v22  ;;  %595 = vst [vmem:[#allocation3 + $0x38] sm:$0xf] %v589_v23  ;;  %v1131_v60 = vpack.c.bf16 %v697_v52, %v694_v59 }
 0x141   : > { %v630_v24 = vpop.permute.xlu1 %629  ;;  %v604_v25 = vpop.permute.xlu0 %603 }
 0x142   : > { %v636_v36 = vsel %vm635_vm5, %v628_v15, %v630_v24  ;;  %v637_v26 = vsel %vm635_vm5, %v630_v24, %v1490_v21  ;;  %v612_v27 = vsel %vm611_vm7, %v604_v25, %v606_v8 }
 0x143   : > { %642 = vst [vmem:[#allocation3 + $0x48] sm:$0xf] %v636_v36  ;;  %643 = vst [vmem:[#allocation3 + $0x50] sm:$0xf] %v637_v26 }
 0x144   : > { %618 = vst [vmem:[#allocation3 + $0x30] sm:$0xf0] %v612_v27 }
 0x145   : > { %v515_v28 = vpop.permute.xlu1 %514  ;;  %v652_v31 = vpop.permute.xlu0 %651 }
 0x146   : > { %v660_v32 = vsel %vm659_vm8, %v652_v31, %v654_v4 }
 0x147   : > { %666 = vst [vmem:[#allocation3 + $0x48] sm:$0xf0] %v660_v32 }
 0x149   : > { %v562_v33 = vpop.permute.xlu1 %561  ;;  %v678_v34 = vpop.permute.xlu0 %677 }
 0x14d   : > { %v513_v7 = vpop.permute.xlu1 %512  ;;  %v608_v37 = vpop.permute.xlu0 %607 }
 0x14e   : > { %v517_v38 = vsel %vm348_vm0, %v511_v6, %v513_v7  ;;  %v518_v39 = vsel %vm348_vm0, %v513_v7, %v515_v28  ;;  %v613_v40 = vsel %vm611_vm7, %v606_v8, %v608_v37  ;;  %vm683_vm0 = vcmask 736256   ;;  %v703_v29 = vld [vmem:[#allocation3 + $0x48] sm:$0xff] }
 0x14f   : > { %523 = vst [vmem:[#allocation3 + $0x8] sm:$0xf0] %v517_v38  ;;  %524 = vst [vmem:[#allocation3 + $0x10] sm:$0xf0] %v518_v39 }
 0x150   : > { %619 = vst [vmem:[#allocation3 + $0x38] sm:$0xf0] %v613_v40 }
 0x151   : > { %v560_v41 = vpop.permute.xlu1 %559  ;;  %v656_v42 = vpop.permute.xlu0 %655 }
 0x152   : > { %v565_v43 = vsel %vm563_vm3, %v558_v9, %v560_v41  ;;  %v566_v44 = vsel %vm563_vm3, %v560_v41, %v562_v33  ;;  %v661_v45 = vsel %vm659_vm8, %v654_v4, %v656_v42  ;;  %v700_v9 = vld [vmem:[#allocation3 + $0x30] sm:$0xff] }
 0x153   : > { %571 = vst [vmem:[#allocation3 + $0x20] sm:$0xf0] %v565_v43  ;;  %572 = vst [vmem:[#allocation3 + $0x28] sm:$0xf0] %v566_v44  ;;  %v1135_v4 = vpack.c.bf16 %v703_v29, %v700_v9 }
 0x154   : > { %667 = vst [vmem:[#allocation3 + $0x50] sm:$0xf0] %v661_v45 }
 0x155   : > { %v610_v46 = vpop.permute.xlu1 %609  ;;  %v538_v47 = vpop.permute.xlu0 %537 }
 0x156   : > { %v614_v48 = vsel %vm611_vm7, %v608_v37, %v610_v46  ;;  %v542_v49 = vsel %vm539_vm2, %v536_v17, %v538_v47  ;;  %v695_v55 = vld [vmem:[#allocation3 + $0x8] sm:$0xff]  ;;  %v696_v5 = vld [vmem:[#allocation3 + $0x10] sm:$0xff] }
 0x157   : > { %620 = vst [vmem:[#allocation3 + $0x40] sm:$0xf0] %v614_v48  ;;  %548 = vst [vmem:[#allocation3 + $0x28] sm:$0xf] %v542_v49  ;;  %v701_v61 = vld [vmem:[#allocation3 + $0x38] sm:$0xff]  ;;  %v693_v17 = vld [vmem:[%s1540_s1] sm:$0xff] }
 0x159   : > { %v658_v50 = vpop.permute.xlu1 %657  ;;  %v586_v51 = vpop.permute.xlu0 %585 }
 0x15a   : > { %v662_v53 = vsel %vm659_vm8, %v656_v42, %v658_v50  ;;  %v590_v54 = vsel %vm587_vm4, %v584_v18, %v586_v51  ;;  %v698_v56 = vld [vmem:[#allocation3 + $0x20] sm:$0xff] }
 0x15b   : > { %v704_v57 = vld [vmem:[#allocation3 + $0x50] sm:$0xff]  ;;  %668 = vst [vmem:[#allocation3 + $0x58] sm:$0xf0] %v662_v53  ;;  %596 = vst [vmem:[#allocation3 + $0x40] sm:$0xf] %v590_v54  ;;  %v1129_v58 = vpack.c.bf16 %v698_v56, %v695_v55 }
 0x15c   : > { %v1133_v1 = vpack.c.bf16 %v704_v57, %v701_v61 }
 0x15d   : > { %v680_v62 = vpop.permute.xlu1 %679  ;;  %1130 = vmatprep.subr.bf16.mxu0 %v1129_v58  ;;  %v634_v63 = vpop.permute.xlu0 %633 }
 0x15e   : > { %v685_v35 = vsel %vm683_vm0, %v678_v34, %v680_v62  ;;  %v638_v3 = vsel %vm635_vm5, %v1490_v21, %v634_v63  ;;  %1132 = vmatpush1.bf16.msra.mxu0 %v1131_v60  ;;  %v699_v6 = vld [vmem:[#allocation3 + $0x28] sm:$0xff] }
 0x15f   : > { %691 = vst [vmem:[#allocation3 + $0x68] sm:$0xf] %v685_v35  ;;  %644 = vst [vmem:[#allocation3 + $0x58] sm:$0xf] %v638_v3  ;;  %1134 = vmatprep.subr.bf16.mxu0 %v1133_v1  ;;  %v1138_v8 = vpack.c.bf16 %v699_v6, %v696_v5 }
 0x161   : > { %v682_v10 = vpop.permute.xlu1 %681  ;;  %1139 = vmatpush3.bf16.msra.mxu1 %v1138_v8  ;;  %v676_v11 = vpop.permute.xlu0 %675 }
 0x162   : > { %v686_v12 = vsel %vm683_vm0, %v680_v62, %v682_v10  ;;  %v684_v13 = vsel %vm683_vm0, %v676_v11, %v678_v34  ;;  %1136 = vmatpush1.bf16.msra.mxu0 %v1135_v4  ;;  %1140 = vmatprep.subr.bf16.mxu1 %v1221_v2  ;;  %v702_v15 = vld [vmem:[#allocation3 + $0x40] sm:$0xff] }
 0x163   : > { %692 = vst [vmem:[#allocation3 + $0x70] sm:$0xf] %v686_v12  ;;  %690 = vst [vmem:[#allocation3 + $0x60] sm:$0xf] %v684_v13 }
 0x166   : > { %v707_v14 = vld [vmem:[#allocation3 + $0x68] sm:$0xf]  ;;  %v705_v30 = vld [vmem:[#allocation3 + $0x58] sm:$0xff] }
 0x167   : > { %1093 = vmatprep.subr.msk.mxu0 %vm226_vm6, %v707_v14  ;;  %v1141_v16 = vpack.c.bf16 %v705_v30, %v702_v15 }
 0x169   : > { %1142 = vmatpush3.bf16.msra.mxu1 %v1141_v16 }
 0x16a   : > { %v706_v18 = vld [vmem:[#allocation3 + $0x60] sm:$0xf]  ;;  %1119 = vmatprep.subr.mxu1 %v1199_v0  ;;  %v708_v2 = vld [vmem:[#allocation3 + $0x70] sm:$0xf] }
 0x16b   : > { %1094 = vmatpush1.msk.msra.mxu0 %vm226_vm6, %v706_v18 }
 0x16c   : > { %1095 = vmatmul.mubr.msk.f32.vlgmr.msra.gmra.mrb[0].mxu0 %vm715_vm9, %v693_v17 }
 0x16d   : > { %1120 = vmatpush3.msk.msra.mxu1 %vm226_vm6, %v708_v2  ;;  %947 = vmatprep.mubr.f32.mxu0 %v1199_v0  ;;  %vm879_vm6 = vcmask 64512  }
 0x16e   : > { %1122 = vmatmul.mubr.msk.f32.vlgmr.msra.gmra.mrb[0].mxu1 %vm715_vm9, %v693_v17  ;;  %1124 = vmatprep.subr.mxu1 %v1199_v0 }
 0x16f   : > { %1126 = vmatprep.mubr.msk.f32.mxu1 %vm1222_vm1, %v1199_v0  ;;  %v872_v0 = vld [vmem:[%s1542_s3] sm:$0xf] }
 0x172   : > { %v713_v20 = vpop.permute.xlu0 %712 }
 0x1bb   : > { %v877_v32 = vpop.permute.xlu1 %876 }
 0x23f   : > { %v794_v21 = vpop.f32.mrb[0].mxu0 }
 0x240   : > { %v795_v22 = vadd.f32 %v794_v21, %v713_v20  ;;  %v796_v23 = vpop.f32.mrb[1].mxu0 }
 0x241   : > { %v797_v24 = vadd.f32 %v796_v23, %v713_v20  ;;  %v865_v25 = vpop.f32.mrb[0].mxu1 }
 0x242   : > { %v866_v36 = vadd.f32 %v865_v25, %v713_v20  ;;  %v1123_v26 = vpop.f32.mrb[1].mxu1  ;;  %v869_v28 = vmax.f32 %v795_v22, 0.0 }
 0x243   : > { %v870_v27 = vmax.f32 %v797_v24, 0.0 }
 0x244   : > { %v871_v31 = vmax.f32 %v866_v36, 0.0 }
 0x245   : > { %883 = vmatprep.subr.mxu0 %v870_v27 }
 0x246   : > { %884 = vmatpush1.msra.mxu0 %v869_v28  ;;  %1125 = vmatpush3.msra.mxu1 %v871_v31 }
 0x247   : > { %1098 = vmatmul.mubr.msk.f32.vlgmr.msra.gmra.mrb[2].mxu0 %vm879_vm6, %v872_v0  ;;  %1127 = vmatmul.mubr.msk.f32.vlgmr.msra.gmra.mrb[2].mxu1 %vm879_vm6, %v872_v0 }
 0x31a   : > { %v949_v33 = vpop.f32.mrb[2].mxu0  ;;  %v1020_v34 = vpop.f32.mrb[2].mxu1 }
 0x31b   : > { %v950_v7 = vadd.f32 %v949_v33, %v877_v32  ;;  %v951_v37 = vpop.f32.mrb[3].mxu0  ;;  %v1021_v38 = vadd.f32 %v1020_v34, %v877_v32  ;;  %v1128_v39 = vpop.f32.mrb[3].mxu1 }
 0x31c   : > { %v952_v40 = vadd.f32 %v951_v37, %v877_v32 }
 0x31d   : > { %1029 = vst [vmem:[%s224_s8 + $0x8] sm:$0xf] %v1021_v38 }
 0x31e   : > { %v1026_v41 = vcombine.low %v950_v7, %v952_v40 }
 0x320   : > { %1028 = vst [vmem:[%s224_s8] sm:$0xff] %v1026_v41 }
 0x321 PF: > { %s15_s18 = sadd.s32 1, %s1197_s18  }
 0x322   : > { %p12_p4 = scmp.ge.s32.totalorder %s15_s18, 4  }
 0x324   :  { %14 = sbr.rel (!%p12_p4) target bundleno = 1 (0x1), region = 70 }

</bundles_post_ra>
